<compile_context>
chip_gen: v5e
topology: v5e:2x2
jax: 0.10.0
libtpu: 0.0.40
codegen_flags: <defaults>
</compile_context>

<pallas_src>
import functools

import jax
import jax.numpy as jnp
from jax.experimental import pallas as pl
from jax.experimental.pallas import tpu as pltpu


def _class_head_kernel(x_ref, w_ref, b_ref, o_ref):
    """One spatial tile: 1x1-conv-as-matmul + bias + pairwise softmax.

    x_ref: (1, Cin, tm)  activations for one batch / spatial tile (lane-dense)
    w_ref: (2A, Cin)     conv weight, rows = [pair0 anchors..., pair1 anchors...]
    b_ref: (2A, 1)       conv bias, same row order
    o_ref: (1, 2A, tm)   probabilities, rows = [p0 anchors..., p1 anchors...]
    """
    x = x_ref[0]                                                    # (Cin, tm)
    logits = jnp.dot(w_ref[...], x,
                     preferred_element_type=jnp.float32) + b_ref[...]   # (2A, tm)
    a = logits.shape[0] // 2
    # pairwise softmax over (l0, l1): p1 = sigmoid(l1 - l0), p0 = 1 - p1
    d = logits[:a, :] - logits[a:, :]                               # l0 - l1
    p1 = 1.0 / (1.0 + jnp.exp(d))
    p0 = 1.0 - p1
    o_ref[0] = jnp.concatenate([p0, p1], axis=0).astype(o_ref.dtype)


@functools.partial(jax.jit, static_argnames=("num_anchors", "tm"))
def class_head_forward(x_nchw, weight, bias, *, num_anchors=3, tm=512):
    """ClassHead forward.

    x_nchw: (B, Cin, H, W) float32
    weight: (2*A, Cin) float32  (conv1x1 weight squeezed over the 1x1 kernel dims)
    bias:   (2*A,)     float32
    returns (B, H*W*A, 2) float32
    """
    B, Cin, H, W = x_nchw.shape
    A = num_anchors
    assert weight.shape == (2 * A, Cin)
    HW = H * W

    # ---- glue (tiny): reorder conv-output channels so kernel rows are
    #      [pair-element-0 for all anchors, pair-element-1 for all anchors]
    w_r = jnp.concatenate([weight[0::2, :], weight[1::2, :]], axis=0)   # (2A, Cin)
    b_r = jnp.concatenate([bias[0::2], bias[1::2]]).reshape(2 * A, 1)   # (2A, 1)

    # Free reshape (no transpose): NCHW -> (B, Cin, HW)
    x3 = x_nchw.reshape(B, Cin, HW)

    # Spatial tile: lane-dense (multiple of 128) unless HW itself is smaller.
    if HW <= tm:
        tm_eff = HW
        hw_pad = HW
    else:
        tm_eff = tm
        hw_pad = pl.cdiv(HW, tm_eff) * tm_eff
    if hw_pad != HW:
        x3 = jnp.pad(x3, ((0, 0), (0, 0), (0, hw_pad - HW)))

    grid = (B, hw_pad // tm_eff)
    out = pl.pallas_call(
        _class_head_kernel,
        out_shape=jax.ShapeDtypeStruct((B, 2 * A, hw_pad), jnp.float32),
        grid_spec=pl.GridSpec(
            grid=grid,
            in_specs=[
                pl.BlockSpec((1, Cin, tm_eff), lambda b, j: (b, 0, j)),
                pl.BlockSpec((2 * A, Cin), lambda b, j: (0, 0)),
                pl.BlockSpec((2 * A, 1), lambda b, j: (0, 0)),
            ],
            out_specs=pl.BlockSpec((1, 2 * A, tm_eff), lambda b, j: (b, 0, j)),
        ),
        compiler_params=pltpu.CompilerParams(
            dimension_semantics=("parallel", "parallel"),
        ),
    )(x3, w_r, b_r)

    # ---- glue (output is Cin/2A x smaller than input): drop spatial padding,
    # then (B, 2A, HW) -> (B, HW, A, 2) -> (B, HW*A, 2)
    out = out[:, :, :HW]
    out = out.reshape(B, 2, A, HW)
    out = jnp.transpose(out, (0, 3, 2, 1))                  # (B, HW, A, 2)
    return out.reshape(B, HW * A, 2)


def _reference(x_nchw, weight, bias, num_anchors):
    """Pure-JAX reference matching the PyTorch module."""
    B, Cin, H, W = x_nchw.shape
    A = num_anchors
    out = jnp.einsum("bchw,oc->bhwo", x_nchw, weight) + bias          # (B,H,W,2A)
    out = out.reshape(B, H, W, A, 2)
    out = jax.nn.softmax(out, axis=-1)
    return out.reshape(B, -1, 2)


if __name__ == "__main__":
    # small, deterministic problem: B=2, Cin=16, H=W=16, num_anchors=3
    B, Cin, H, W, A = 2, 16, 16, 16, 3

    key = jax.random.PRNGKey(0)
    kx, kw, kb = jax.random.split(key, 3)
    x = jax.random.normal(kx, (B, Cin, H, W), dtype=jnp.float32)
    weight = 0.1 * jax.random.normal(kw, (2 * A, Cin), dtype=jnp.float32)
    bias = 0.01 * jax.random.normal(kb, (2 * A,), dtype=jnp.float32)

    # tm=128 here so the small test still exercises multiple spatial tiles.
    out = class_head_forward(x, weight, bias, num_anchors=A, tm=128)
    out = jax.block_until_ready(out)

    ref = _reference(x, weight, bias, A)
    assert out.shape == (B, H * W * A, 2), out.shape
    assert jnp.allclose(out, ref, atol=1e-5, rtol=1e-5), "mismatch vs reference"

    print("KERNEL_OK")
</pallas_src>

<mosaic_0001>
module attributes {stable_mosaic.version = 11 : i64} {
  func.func @_class_head_kernel(%arg0: i32, %arg1: i32, %arg2: memref<1x16x128xf32, #tpu.memory_space<vmem>>, %arg3: memref<6x16xf32, #tpu.memory_space<vmem>>, %arg4: memref<6x1xf32, #tpu.memory_space<vmem>>, %arg5: memref<1x6x128xf32, #tpu.memory_space<vmem>>) attributes {dimension_semantics = [#tpu.dimension_semantics<parallel>, #tpu.dimension_semantics<parallel>], iteration_bounds = array<i64: 2, 2>, scalar_prefetch = 0 : i64, scratch_operands = 0 : i64, tpu.core_type = #tpu.core_type<tc>, window_params = [{transform_indices = @transform_0, window_bounds = array<i64: 1, 16, 128>}, {pipeline_mode = #tpu.pipeline_mode<synchronous>, transform_indices = @transform_1, window_bounds = array<i64: 6, 16>}, {pipeline_mode = #tpu.pipeline_mode<synchronous>, transform_indices = @transform_2, window_bounds = array<i64: 6, 1>}, {transform_indices = @transform_3, window_bounds = array<i64: 1, 6, 128>}]} {
    %c0 = arith.constant 0 : index
    %c0_0 = arith.constant 0 : index
    %c0_1 = arith.constant 0 : index
    %0 = vector.load %arg2[%c0, %c0_0, %c0_1] : memref<1x16x128xf32, #tpu.memory_space<vmem>>, vector<1x16x128xf32>
    %1 = vector.shape_cast %0 : vector<1x16x128xf32> to vector<16x128xf32>
    %c0_2 = arith.constant 0 : index
    %c0_3 = arith.constant 0 : index
    %2 = vector.load %arg3[%c0_2, %c0_3] : memref<6x16xf32, #tpu.memory_space<vmem>>, vector<6x16xf32>
    %cst = arith.constant dense<0.000000e+00> : vector<6x128xf32>
    %3 = tpu.matmul %2, %1, %cst {dimension_numbers = #tpu.dot_dimension_numbers<[1], [0], [0], [1], [0, 0, 1, 1], [], []>} : vector<6x16xf32>, vector<16x128xf32>, vector<6x128xf32> -> vector<6x128xf32>
    %c0_4 = arith.constant 0 : index
    %c0_5 = arith.constant 0 : index
    %4 = vector.load %arg4[%c0_4, %c0_5] : memref<6x1xf32, #tpu.memory_space<vmem>>, vector<6x1xf32>
    %5 = vector.broadcast %4 : vector<6x1xf32> to vector<6x128xf32>
    %6 = arith.addf %3, %5 : vector<6x128xf32>
    %7 = vector.extract_strided_slice %6 {offsets = [0, 0], sizes = [3, 128], strides = [1, 1]} : vector<6x128xf32> to vector<3x128xf32>
    %8 = vector.extract_strided_slice %6 {offsets = [3, 0], sizes = [3, 128], strides = [1, 1]} : vector<6x128xf32> to vector<3x128xf32>
    %9 = arith.subf %7, %8 : vector<3x128xf32>
    %10 = math.exp %9 : vector<3x128xf32>
    %cst_6 = arith.constant 1.000000e+00 : f32
    %11 = vector.broadcast %cst_6 : f32 to vector<3x128xf32>
    %12 = arith.addf %11, %10 : vector<3x128xf32>
    %cst_7 = arith.constant 1.000000e+00 : f32
    %13 = vector.broadcast %cst_7 : f32 to vector<3x128xf32>
    %14 = arith.divf %13, %12 : vector<3x128xf32>
    %cst_8 = arith.constant 1.000000e+00 : f32
    %15 = vector.broadcast %cst_8 : f32 to vector<3x128xf32>
    %16 = arith.subf %15, %14 : vector<3x128xf32>
    %17 = tpu.concatenate %16, %14 in 0 : vector<3x128xf32>, vector<3x128xf32> -> vector<6x128xf32>
    %c0_9 = arith.constant 0 : index
    %c0_10 = arith.constant 0 : index
    %c0_11 = arith.constant 0 : index
    %18 = vector.load %arg5[%c0_9, %c0_10, %c0_11] : memref<1x6x128xf32, #tpu.memory_space<vmem>>, vector<1x6x128xf32>
    %19 = vector.shape_cast %18 : vector<1x6x128xf32> to vector<6x128xf32>
    %20 = vector.shape_cast %17 : vector<6x128xf32> to vector<1x6x128xf32>
    tpu.vector_store %arg5[%c0_9, %c0_10, %c0_11], %20 {strides = array<i32>} : memref<1x6x128xf32, #tpu.memory_space<vmem>>, vector<1x6x128xf32>,
    return
  }
  func.func @transform_0(%arg0: i32, %arg1: i32) -> (i32, i32, i32) {
    %c0_i32 = arith.constant 0 : i32
    %c0_i32_0 = arith.constant 0 : i32
    return %arg0, %c0_i32, %arg1 : i32, i32, i32
  }
  func.func @transform_1(%arg0: i32, %arg1: i32) -> (i32, i32) {
    %c0_i32 = arith.constant 0 : i32
    %c0_i32_0 = arith.constant 0 : i32
    %c0_i32_1 = arith.constant 0 : i32
    return %c0_i32, %c0_i32_0 : i32, i32
  }
  func.func @transform_2(%arg0: i32, %arg1: i32) -> (i32, i32) {
    %c0_i32 = arith.constant 0 : i32
    %c0_i32_0 = arith.constant 0 : i32
    %c0_i32_1 = arith.constant 0 : i32
    return %c0_i32, %c0_i32_0 : i32, i32
  }
  func.func @transform_3(%arg0: i32, %arg1: i32) -> (i32, i32, i32) {
    %c0_i32 = arith.constant 0 : i32
    %c0_i32_0 = arith.constant 0 : i32
    return %arg0, %c0_i32, %arg1 : i32, i32, i32
  }
}

</mosaic_0001>

<bundles_post_ra>
// kernel: class_head_forward.1
= control target key start
LH: loop header
LB: loop body
LE: loop exit
PB: predicated region body
PF: predicated region fallthrough
CT: control target
= control target key end

     0   :  { %s537_s12 = smov 0   ;;  %s539_s13 = smov 0   ;;  %s634_s0 = inlined_call_operand.vmem [shape: f32[2,16,256], index: 0, kind: input, shape index: {}]   ;;  %s635_s1 = inlined_call_operand.vmem [shape: f32[6,16], index: 1, kind: input, shape index: {}]   ;;  %s636_s2 = inlined_call_operand.vmem [shape: f32[6,1], index: 2, kind: input, shape index: {}]   ;;  %s637_s3 = inlined_call_operand.vmem [shape: f32[2,6,256], index: 3, kind: output, shape index: {}]  }
   0x1   :  { %s541_s14 = smov 0   ;;  %s543_s15 = smov 0  }
   0x2   :  { %s545_s16 = smov 0   ;;  %s547_s17 = smov 0  }
   0x3   :  { %s549_s18 = smov 0  }
   0x4 LB: > { %s22_s19 = sadd.s32 1, %s506_s16  ;;  %s25_s20 = sadd.s32 1, %s510_s17  ;;  %s514_s18 = sphi %s549_s18, %s13_s18   ;;  %s510_s17 = sphi %s547_s17, %s643_s17   ;;  %s506_s16 = sphi %s545_s16, %s642_s16   ;;  %s502_s15 = sphi %s543_s15, %s641_s15   ;;  %s498_s14 = sphi %s541_s14, %s640_s14   ;;  %s494_s13 = sphi %s539_s13, %s639_s13   ;;  %s490_s12 = sphi %s537_s12, %s638_s12  }
   0x5   : > { %p23_p0 = scmp.ge.s32.totalorder %s22_s19, 2  ;;  %p41_p1 = scmp.ne.s32.totalorder %s494_s13, %s490_s12 }
   0x6   : > { %p42_p2 = scmp.eq.s32.totalorder %s514_s18, 0  ;;  %s34_s24 = sadd.s32 1, %s494_s13 }
   0x7   : > { %s645_s19 = smov (%p23_p0, %s22_s19), 0  ;;  %s647_s20 = smov (!%p23_p0, %s25_s20), %s510_s17 }
   0x8   : > { %p43_p3 = por %p42_p2, %p41_p1  ;;  %p27_p4 = scmp.ge.s32.totalorder %s647_s20, 2 }
   0x9   : > { %s30_s21 = ssub.s32 %s506_s16, %s645_s19  ;;  %p387_p6 = scmp.ge.s32.totalorder %s514_s18, 4 }
   0xa   : > { %s649_s20 = smov (%p27_p4, %s647_s20), 0 }
   0xb   : > { %s29_s22 = ssub.s32 %s510_s17, %s649_s20  ;;  %143 = sbr.rel (%p387_p6) target bundleno = 24 (0x18), region = 24 }
   0xc   : > { %s31_s23 = sor.u32 %s30_s21, %s29_s22 }
   0xd   : > { %p32_p5 = scmp.eq.s32.totalorder %s31_s23, 0 }
   0xf   : > { %s588_s25 = scalar_select %p32_p5, %s494_s13, %s34_s24  }
  0x10   : > { %146 = sbr.rel (!%p43_p3) target bundleno = 24 (0x18), region = 28  ;;  %s148_s26 = sand.u32 (%p43_p3), 1, %s494_s13  }
  0x11   : > { %s389_s27 = sshll.u32 (%p43_p3), %s510_s17, 2  ;;  %s388_s28 = sshll.u32 (%p43_p3), %s148_s26, 4 }
  0x12   : > { %s152_s29 = sadd.s32 (%p43_p3), %s506_s16, %s389_s27  ;;  %s150_s7 = scalar_lea.vmem (%p43_p3), [#allocation2], %s388_s28 }
  0x13   : > { %s390_s30 = sshll.u32 (%p43_p3), %s152_s29, 3 }
  0x14   : > { %s154_s6 = scalar_lea.vmem (%p43_p3), %s634_s0, %s390_s30 }
  0x15   : > { %v185_v0 = vld [vmem:[%s154_s6] sm:$0xff]  ;;  %v187_v1 = vld [vmem:[%s154_s6 + $0x10] sm:$0xff] }
  0x16   : > { %186 = vst [vmem:[%s150_s7] sm:$0xff] %v185_v0 }
  0x17   : > { %188 = vst [vmem:[%s150_s7 + $0x8] sm:$0xff] %v187_v1 }
  0x18 PF: > { %p391_p7 = scmp.ge.s32.totalorder %s514_s18, 1  ;;  %p193_p8 = scmp.lt.s32.totalorder %s514_s18, 5 }
  0x1a   : > { %p194_p9 = pnand %p391_p7, %p193_p8 }
  0x1b   : > { %s200_s8 = sand.u32 (!%p194_p9), 1, %s490_s12   ;;  %p226_p10 = scmp.lt.s32.totalorder (!%p194_p9), %s502_s15, 1 }
  0x1c   : > { %197 = sbr.rel (%p194_p9) target bundleno = 201 (0xc9), region = 66  ;;  %s392_s9 = sshll.u32 (!%p194_p9), %s200_s8, 4 }
  0x1d   : > { %s202_s21 = scalar_lea.vmem (!%p194_p9), [#allocation2], %s392_s9  ;;  %p228_p11 = scmp.lt.s32.totalorder (!%p194_p9), %s498_s14, 1 }
  0x21   : > { %v516_v2 = vmov 0   ;;  %v237_v3 = vld [vmem:[%s636_s2] sm:$0x3f]  ;;  %v235_v4 = vld [vmem:[%s202_s21 + $0x8] sm:$0xff]  ;;  %vm243_vm0 = vcmask 130048   ;;  %s651_s15 = smov (!%p226_p10, %s502_s15), 1 }
  0x22   : > { %455 = vset.pattern.permute.xlu0 %v516_v2  ;;  %v234_v5 = vld [vmem:[%s202_s21] sm:$0xff]  ;;  %261 = vmatpush.msra.mxu0 %v235_v4  ;;  %s653_s14 = smov (!%p228_p11, %s498_s14), 1  ;;  %s393_s12 = sshll.u32 %s651_s15, 1  ;;  %vm293_vm5 = vcmask 1042432  }
  0x23   : > { %240 = vperm.xlu0 %455, %v237_v3   ;;  %v236_v6 = vld [vmem:[%s635_s1] sm:$0x3f]  ;;  %s231_s24 = sadd.s32 %s393_s12, %s653_s14 }
  0x24   : > { %262 = vmatpush.msra.mxu0 %v234_v5  ;;  %s394_s26 = sshll.u32 %s231_s24, 3 }
  0x25   : > { %395 = vmatmul.msk.f32.vlgmr.msra.gmra.mxu0 %vm243_vm0, %v236_v6  ;;  %s233_s29 = scalar_lea.vmem %s637_s3, %s394_s26 }
  0x95   : > { %v241_v7 = vpop.permute.xlu0 %240 }
  0xa2   : > { %v264_v8 = vpop.f32.mrf.mxu0 }
  0xa3   : > { %v265_v9 = vadd.f32 %v264_v8, %v241_v7 }
  0xa5   : > { %v268_v10 = vrot.slane %v265_v9, 3 }
  0xa7   : > { %v270_v11 = vsub.f32 %v265_v9, %v268_v10 }
  0xa9   : > { %v271_v12 = vmul.f32 1.442695, %v270_v11 }
  0xab   : > { %456 = vpow2.f32 %v271_v12 }
  0xb1   : > { %v457_v13 = vpop.eup %456 }
  0xb2   : > { %v273_v14 = vadd.f32 1.0, %v457_v13 }
  0xb4   : > { %458 = vrcp.f32 %v273_v14  ;;  %v285_v18 = vand.u32 2147483648, %v273_v14  ;;  %v283_v20 = vand.u32 2147483647, %v273_v14  ;;  %vm279_vm2 = vweird.f32 %v273_v14 }
  0xb6   : > { %v286_v22 = vor.u32 1.1754944e-38, %v285_v18  ;;  %vm284_vm4 = vcmp.eq.f32.partialorder %v283_v20, 8.507059e+37 }
  0xba   : > { %v459_v15 = vpop.eup %458 }
  0xbb   : > { %v275_v16 = vmul.f32 %v459_v15, %v273_v14  ;;  %vm280_vm1 = vweird.f32 %v459_v15 }
  0xbc   : > { %vm281_vm3 = vmor %vm279_vm2, %vm280_vm1 }
  0xbd   : > { %v276_v17 = vsub.f32 1.0, %v275_v16 }
  0xbf   : > { %v277_v19 = vmul.f32 %v459_v15, %v276_v17 }
  0xc1   : > { %v278_v21 = vadd.f32 %v459_v15, %v277_v19 }
  0xc3   : > { %v282_v23 = vsel %vm281_vm3, %v459_v15, %v278_v21 }
  0xc4   : > { %v287_v24 = vsel %vm284_vm4, %v286_v22, %v282_v23 }
  0xc5   : > { %v289_v25 = vsub.f32 1.0, %v287_v24  ;;  %v291_v26 = vrot.slane %v287_v24, 5 }
  0xc7   : > { %v294_v27 = vsel %vm293_vm5, %v289_v25, %v291_v26 }
  0xc8   : > { %295 = vst [vmem:[%s233_s29] sm:$0x3f] %v294_v27 }
  0xc9 PF: > { %s13_s18 = sadd.s32 1, %s514_s18   ;;  %s638_s12 = smov %s494_s13 }
  0xca   : > { %p10_p12 = scmp.ge.s32.totalorder %s13_s18, 6   ;;  %s639_s13 = smov %s588_s25 }
  0xcb   : > { %s640_s14 = smov %s506_s16  ;;  %s641_s15 = smov %s510_s17 }
  0xcc   : > { %s642_s16 = smov %s645_s19  ;;  %s643_s17 = smov %s649_s20 }
  0xcd   :  { %12 = sbr.rel (!%p10_p12) target bundleno = 4 (0x4), region = 105 }

</bundles_post_ra>
